<compile_context>
chip_gen: v7x
topology: tpu7x:2x2x1
jax: 0.10.0
libtpu: 0.0.40
codegen_flags: <defaults>
</compile_context>

<pallas_src>
import functools
import math

import jax
import jax.numpy as jnp
from jax.experimental import pallas as pl
from jax.experimental.pallas import tpu as pltpu

EPS = 1e-5


def _merge_kernel(x_ref, w_even_ref, w_odd_ref, bias_ref, o_ref, *, compute_dtype):
    """One grid step: LayerNorm(4C) + Linear(4C->2C) over a block of H-pair rows.

    x_ref:    (tm, 2, Wo, 2C)  even/odd H rows; features [x0|x2] / [x1|x3]
    w_*_ref:  (2C, 2C)         gamma-folded halves of the reduction weight
    bias_ref: (1, 2C)          beta @ W^T
    o_ref:    (tm*Wo, 2C)
    """
    # Load the two halves straight from the (double-buffered) pipeline buffer;
    # no full-block f32 copy of the 4-D block is materialized.
    even = x_ref[:, 0, :, :].astype(jnp.float32)   # (tm, Wo, 2C) = [x0 | x2]
    odd = x_ref[:, 1, :, :].astype(jnp.float32)    # (tm, Wo, 2C) = [x1 | x3]
    tm, wo, c2 = even.shape
    inv_c4 = 1.0 / (2 * c2)

    # One-pass LayerNorm statistics over the full 4C feature group, in f32.
    s = jnp.sum(even, axis=-1, keepdims=True) + jnp.sum(odd, axis=-1, keepdims=True)
    sq = (jnp.sum(even * even, axis=-1, keepdims=True)
          + jnp.sum(odd * odd, axis=-1, keepdims=True))
    mean = s * inv_c4
    var = jnp.maximum(sq * inv_c4 - mean * mean, 0.0)
    inv = jax.lax.rsqrt(var + EPS)

    # Normalize + cast in one fused expression, flatten rows for the MXU.
    # (If Wo is not a multiple of the sublane tile this merge is a VMEM-local
    # sublane repack; the kernel is HBM-bound so it stays off the critical path.)
    en = ((even - mean) * inv).reshape(tm * wo, c2).astype(compute_dtype)
    on = ((odd - mean) * inv).reshape(tm * wo, c2).astype(compute_dtype)

    acc = jnp.dot(en, w_even_ref[...], preferred_element_type=jnp.float32)
    acc = acc + jnp.dot(on, w_odd_ref[...], preferred_element_type=jnp.float32)
    acc = acc + bias_ref[...].astype(jnp.float32)
    o_ref[...] = acc.astype(o_ref.dtype)


def _vmem_budgets():
    """Returns (input-block f32-equivalent byte budget, scoped-VMEM limit).

    v5e/v6e have 128 MiB VMEM, v7x only 64 MiB per TensorCore; unknown parts get
    the conservative (v7x) budget.  Per-step residency is roughly
    2x input buf + 2x output buf + ~3x input-block of f32 temporaries, so these
    budgets keep total use well inside the scoped limit on every generation.
    """
    vmem_phys = 0
    try:
        vmem_phys = int(getattr(pltpu.get_tpu_info(), "vmem_capacity_bytes", 0))
    except Exception:
        vmem_phys = 0
    if vmem_phys >= 100 * 1024 * 1024:            # v5e / v6e (128 MiB VMEM)
        return 8 * 1024 * 1024, 64 * 1024 * 1024
    return 4 * 1024 * 1024, 48 * 1024 * 1024      # v7x (64 MiB) / unknown


def _pick_tm(n_h, wo, c2, block_budget_bytes):
    """H-pair rows per grid step.

    Sized so one input block is <= block_budget (f32-equivalent) and covers
    O(4K) rows of the logical (N, 4C) matrix: amortizes the ~0.35us per-step
    overhead on this purely HBM-bound kernel while the double-buffered pipeline
    plus the in-kernel f32 temporaries stay inside the scoped-VMEM limit.
    """
    target_matrix_rows = 4096
    row_bytes_f32 = 2 * wo * c2 * 4               # one H-pair row, f32-equivalent
    tm_bytes = max(1, block_budget_bytes // max(row_bytes_f32, 1))
    tm_rows = max(1, target_matrix_rows // max(wo, 1))
    return min(tm_bytes, tm_rows, n_h)


def _round_tm(tm, n_h, wo, out_itemsize):
    """Clamp tm to [1, n_h]; keep tm*Wo a multiple of the output sublane tile."""
    tm = max(1, min(int(tm), n_h))
    if tm >= n_h:
        return n_h
    sub = max(8, 32 // max(out_itemsize, 1))      # 8 (f32), 16 (bf16), 32 (8-bit)
    g = sub // math.gcd(wo, sub)
    tm = max(g, (tm // g) * g)
    return n_h if tm >= n_h else tm


def _fold_params(params, c, matmul_dtype):
    """Fold LayerNorm affine + the fused-layout feature permutation into W.

    Kernel feature order is [x0 | x2] (even H row) and [x1 | x3] (odd H row);
    the module's order is [x0, x1, x2, x3].  LayerNorm statistics are
    permutation invariant, so permuting the gamma-folded weight rows (and using
    the order-invariant bias beta @ W^T) reproduces the module exactly.
    O(C^2) work, negligible next to the kernel itself.
    """
    w_t = params["weight"].T.astype(jnp.float32)               # (4C, 2C)
    w_g = params["gamma"].astype(jnp.float32)[:, None] * w_t   # gamma folded in
    w_even = jnp.concatenate([w_g[0:c], w_g[2 * c:3 * c]], axis=0).astype(matmul_dtype)
    w_odd = jnp.concatenate([w_g[c:2 * c], w_g[3 * c:4 * c]], axis=0).astype(matmul_dtype)
    bias = (params["beta"].astype(jnp.float32) @ w_t).reshape(1, 2 * c)
    return w_even, w_odd, bias


def patch_merging(x, params, *, tm=None, matmul_dtype=jnp.bfloat16):
    """Forward pass of PatchMerging.

    Args:
      x: (B, D, H, W, C) array (f32 or bf16; output dtype matches x).
      params: dict with 'gamma' (4C,), 'beta' (4C,), 'weight' (2C, 4C)
              (PyTorch nn.Linear layout: (out_features, in_features)).
      tm: H-pair rows per grid step (auto-sized / generation-aware if None).
      matmul_dtype: MXU operand dtype; bf16 default (f32 stats + f32 accum,
                    lower precision than the PyTorch module), jnp.float32
                    recovers a full-f32 matmul.
    Returns:
      (B, D, ceil(H/2), ceil(W/2), 2C)
    """
    b, d, h, w, c = x.shape
    if (h % 2 == 1) or (w % 2 == 1):
        # Rare edge path; mirrors the module's F.pad (zero pad at the end).
        x = jnp.pad(x, ((0, 0), (0, 0), (0, h % 2), (0, w % 2), (0, 0)))
        h, w = x.shape[2], x.shape[3]
    ho, wo = h // 2, w // 2
    c2 = 2 * c
    n_h = b * d * ho           # H-pair rows iterated by the grid
    n = n_h * wo               # rows of the logical (N, 4C) matrix

    # Free, contiguous reshape (pure metadata): (B,D,H,W,C) -> (B*D*Ho, 2, Wo, 2C)
    #   [:, 0, j, :] = [x[..,2i,2j,:],   x[..,2i,2j+1,:]]   = [x0 | x2]
    #   [:, 1, j, :] = [x[..,2i+1,2j,:], x[..,2i+1,2j+1,:]] = [x1 | x3]
    xr = x.reshape(n_h, 2, wo, c2)

    w_even, w_odd, bias = _fold_params(params, c, matmul_dtype)

    block_budget, vmem_limit = _vmem_budgets()
    if tm is None:
        tm = _pick_tm(n_h, wo, c2, block_budget)
    tm = _round_tm(tm, n_h, wo, x.dtype.itemsize)

    out2d = pl.pallas_call(
        functools.partial(_merge_kernel, compute_dtype=matmul_dtype),
        out_shape=jax.ShapeDtypeStruct((n, c2), x.dtype),
        grid_spec=pltpu.PrefetchScalarGridSpec(
            num_scalar_prefetch=0,
            grid=(pl.cdiv(n_h, tm),),
            in_specs=[
                pl.BlockSpec((tm, 2, wo, c2), lambda i: (i, 0, 0, 0)),
                # Constant operands (never re-fetched: constant index_map).  For
                # very large C they could also be single-buffered
                # (pipeline_mode=pl.Buffered(1)) to free VMEM for bigger tiles.
                pl.BlockSpec((c2, c2), lambda i: (0, 0)),
                pl.BlockSpec((c2, c2), lambda i: (0, 0)),
                pl.BlockSpec((1, c2), lambda i: (0, 0)),
            ],
            out_specs=pl.BlockSpec((tm * wo, c2), lambda i: (i, 0)),
        ),
        compiler_params=pltpu.CompilerParams(
            # 1-D parallel grid: independent blocks, shards across v7x's 2 TCs.
            dimension_semantics=("parallel",),
            vmem_limit_bytes=vmem_limit,
        ),
    )(xr, w_even, w_odd, bias)

    return out2d.reshape(b, d, ho, wo, c2)


def _reference(x, params):
    """Pure JAX reference mirroring the PyTorch module (full-precision matmul)."""
    _, _, h, w, _ = x.shape
    if (h % 2 == 1) or (w % 2 == 1):
        x = jnp.pad(x, ((0, 0), (0, 0), (0, h % 2), (0, w % 2), (0, 0)))
    x0 = x[:, :, 0::2, 0::2, :]
    x1 = x[:, :, 1::2, 0::2, :]
    x2 = x[:, :, 0::2, 1::2, :]
    x3 = x[:, :, 1::2, 1::2, :]
    xc = jnp.concatenate([x0, x1, x2, x3], axis=-1).astype(jnp.float32)
    mean = jnp.mean(xc, axis=-1, keepdims=True)
    var = jnp.mean((xc - mean) ** 2, axis=-1, keepdims=True)
    xn = (xc - mean) / jnp.sqrt(var + EPS)
    y = xn * params["gamma"] + params["beta"]
    return jnp.einsum("...i,oi->...o", y, params["weight"],
                      precision=jax.lax.Precision.HIGHEST)


if __name__ == "__main__":
    key = jax.random.PRNGKey(0)
    B, D, H, W, C = 2, 2, 8, 8, 32          # dim=32 -> 4C=128, 2C=64

    k_x, k_w, k_g, k_b = jax.random.split(key, 4)
    x = jax.random.normal(k_x, (B, D, H, W, C), dtype=jnp.float32)
    # Shapes from nn.Linear(4C, 2C, bias=False) and nn.LayerNorm(4C).
    params = {
        "weight": 0.02 * jax.random.normal(k_w, (2 * C, 4 * C), dtype=jnp.float32),
        "gamma": 1.0 + 0.01 * jax.random.normal(k_g, (4 * C,), dtype=jnp.float32),
        "beta": 0.01 * jax.random.normal(k_b, (4 * C,), dtype=jnp.float32),
    }

    ref = _reference(x, params)
    out_shape = (B, D, H // 2, W // 2, 2 * C)

    # 1) Full-f32 matmul path, auto (single-block) tiling: module semantics.
    out_f32 = jax.block_until_ready(
        jax.jit(functools.partial(patch_merging, matmul_dtype=jnp.float32))(x, params))
    assert out_f32.shape == out_shape, out_f32.shape
    assert jnp.allclose(out_f32, ref, atol=1e-2, rtol=1e-2), float(
        jnp.max(jnp.abs(out_f32 - ref)))

    # 2) Multi-block grid with a partial tail block (tm=6 -> 3 steps, tail of 4):
    #    exercises the pipeline + masked boundary writes.
    out_tiled = jax.block_until_ready(
        jax.jit(functools.partial(patch_merging, tm=6, matmul_dtype=jnp.float32))(
            x, params))
    assert jnp.allclose(out_tiled, ref, atol=1e-2, rtol=1e-2), float(
        jnp.max(jnp.abs(out_tiled - ref)))

    # 3) Default bf16-MXU path (f32 statistics / f32 accumulation).
    out_bf16mm = jax.block_until_ready(jax.jit(patch_merging)(x, params))
    assert out_bf16mm.shape == out_shape, out_bf16mm.shape
    assert jnp.allclose(out_bf16mm, ref, atol=3e-2, rtol=3e-2), float(
        jnp.max(jnp.abs(out_bf16mm - ref)))

    # 4) bf16 activations in / bf16 out: halves HBM traffic on this
    #    bandwidth-bound kernel (the main roofline win on all generations).
    out_bf16 = jax.block_until_ready(
        jax.jit(patch_merging)(x.astype(jnp.bfloat16), params))
    assert out_bf16.dtype == jnp.bfloat16
    assert jnp.allclose(out_bf16.astype(jnp.float32), ref, atol=1e-1, rtol=1e-1), float(
        jnp.max(jnp.abs(out_bf16.astype(jnp.float32) - ref)))

    print("KERNEL_OK")
</pallas_src>

<mosaic_0001>
module attributes {stable_mosaic.version = 11 : i64} {
  func.func @_merge_kernel(%arg0: i32, %arg1: memref<16x2x4x64xf32, #tpu.memory_space<vmem>>, %arg2: memref<64x64xf32, #tpu.memory_space<vmem>>, %arg3: memref<64x64xf32, #tpu.memory_space<vmem>>, %arg4: memref<1x64xf32, #tpu.memory_space<vmem>>, %arg5: memref<64x64xf32, #tpu.memory_space<vmem>>) attributes {dimension_semantics = [#tpu.dimension_semantics<parallel>], iteration_bounds = array<i64: 1>, scalar_prefetch = 0 : i64, scratch_operands = 0 : i64, tpu.core_type = #tpu.core_type<tc>, window_params = [{transform_indices = @transform_0, window_bounds = array<i64: 16, 2, 4, 64>}, {pipeline_mode = #tpu.pipeline_mode<synchronous>, transform_indices = @transform_1, window_bounds = array<i64: 64, 64>}, {pipeline_mode = #tpu.pipeline_mode<synchronous>, transform_indices = @transform_2, window_bounds = array<i64: 64, 64>}, {pipeline_mode = #tpu.pipeline_mode<synchronous>, transform_indices = @transform_3, window_bounds = array<i64: 1, 64>}, {transform_indices = @transform_4, window_bounds = array<i64: 64, 64>}]} {
    %c0 = arith.constant 0 : index
    %c0_0 = arith.constant 0 : index
    %c0_1 = arith.constant 0 : index
    %c0_2 = arith.constant 0 : index
    %0 = vector.load %arg1[%c0, %c0_0, %c0_1, %c0_2] : memref<16x2x4x64xf32, #tpu.memory_space<vmem>>, vector<16x1x4x64xf32>
    %1 = vector.shape_cast %0 : vector<16x1x4x64xf32> to vector<16x4x64xf32>
    %c0_3 = arith.constant 0 : index
    %c1 = arith.constant 1 : index
    %c0_4 = arith.constant 0 : index
    %c0_5 = arith.constant 0 : index
    %2 = vector.load %arg1[%c0_3, %c1, %c0_4, %c0_5] : memref<16x2x4x64xf32, #tpu.memory_space<vmem>>, vector<16x1x4x64xf32>
    %3 = vector.shape_cast %2 : vector<16x1x4x64xf32> to vector<16x4x64xf32>
    %cst = arith.constant dense<0.000000e+00> : vector<16x4xf32>
    %4 = vector.multi_reduction <add>, %1, %cst [2] : vector<16x4x64xf32> to vector<16x4xf32>
    %5 = vector.shape_cast %4 : vector<16x4xf32> to vector<16x4x1xf32>
    %cst_6 = arith.constant dense<0.000000e+00> : vector<16x4xf32>
    %6 = vector.multi_reduction <add>, %3, %cst_6 [2] : vector<16x4x64xf32> to vector<16x4xf32>
    %7 = vector.shape_cast %6 : vector<16x4xf32> to vector<16x4x1xf32>
    %8 = arith.addf %5, %7 : vector<16x4x1xf32>
    %9 = arith.mulf %1, %1 : vector<16x4x64xf32>
    %cst_7 = arith.constant dense<0.000000e+00> : vector<16x4xf32>
    %10 = vector.multi_reduction <add>, %9, %cst_7 [2] : vector<16x4x64xf32> to vector<16x4xf32>
    %11 = vector.shape_cast %10 : vector<16x4xf32> to vector<16x4x1xf32>
    %12 = arith.mulf %3, %3 : vector<16x4x64xf32>
    %cst_8 = arith.constant dense<0.000000e+00> : vector<16x4xf32>
    %13 = vector.multi_reduction <add>, %12, %cst_8 [2] : vector<16x4x64xf32> to vector<16x4xf32>
    %14 = vector.shape_cast %13 : vector<16x4xf32> to vector<16x4x1xf32>
    %15 = arith.addf %11, %14 : vector<16x4x1xf32>
    %cst_9 = arith.constant 7.812500e-03 : f32
    %16 = vector.broadcast %cst_9 : f32 to vector<16x4x1xf32>
    %17 = arith.mulf %8, %16 : vector<16x4x1xf32>
    %cst_10 = arith.constant 7.812500e-03 : f32
    %18 = vector.broadcast %cst_10 : f32 to vector<16x4x1xf32>
    %19 = arith.mulf %15, %18 : vector<16x4x1xf32>
    %20 = arith.mulf %17, %17 : vector<16x4x1xf32>
    %21 = arith.subf %19, %20 : vector<16x4x1xf32>
    %cst_11 = arith.constant 0.000000e+00 : f32
    %22 = vector.broadcast %cst_11 : f32 to vector<16x4x1xf32>
    %23 = arith.maximumf %21, %22 : vector<16x4x1xf32>
    %cst_12 = arith.constant 9.99999974E-6 : f32
    %24 = vector.broadcast %cst_12 : f32 to vector<16x4x1xf32>
    %25 = arith.addf %23, %24 : vector<16x4x1xf32>
    %26 = math.rsqrt %25 : vector<16x4x1xf32>
    %27 = vector.broadcast %17 : vector<16x4x1xf32> to vector<16x4x64xf32>
    %28 = arith.subf %1, %27 : vector<16x4x64xf32>
    %29 = vector.broadcast %26 : vector<16x4x1xf32> to vector<16x4x64xf32>
    %30 = arith.mulf %28, %29 : vector<16x4x64xf32>
    %31 = vector.shape_cast %30 : vector<16x4x64xf32> to vector<64x64xf32>
    %32 = vector.broadcast %17 : vector<16x4x1xf32> to vector<16x4x64xf32>
    %33 = arith.subf %3, %32 : vector<16x4x64xf32>
    %34 = vector.broadcast %26 : vector<16x4x1xf32> to vector<16x4x64xf32>
    %35 = arith.mulf %33, %34 : vector<16x4x64xf32>
    %36 = vector.shape_cast %35 : vector<16x4x64xf32> to vector<64x64xf32>
    %c0_13 = arith.constant 0 : index
    %c0_14 = arith.constant 0 : index
    %37 = vector.load %arg2[%c0_13, %c0_14] : memref<64x64xf32, #tpu.memory_space<vmem>>, vector<64x64xf32>
    %cst_15 = arith.constant dense<0.000000e+00> : vector<64x64xf32>
    %38 = tpu.matmul %31, %37, %cst_15 {dimension_numbers = #tpu.dot_dimension_numbers<[1], [0], [0], [1], [0, 0, 1, 1], [], []>} : vector<64x64xf32>, vector<64x64xf32>, vector<64x64xf32> -> vector<64x64xf32>
    %c0_16 = arith.constant 0 : index
    %c0_17 = arith.constant 0 : index
    %39 = vector.load %arg3[%c0_16, %c0_17] : memref<64x64xf32, #tpu.memory_space<vmem>>, vector<64x64xf32>
    %cst_18 = arith.constant dense<0.000000e+00> : vector<64x64xf32>
    %40 = tpu.matmul %36, %39, %cst_18 {dimension_numbers = #tpu.dot_dimension_numbers<[1], [0], [0], [1], [0, 0, 1, 1], [], []>} : vector<64x64xf32>, vector<64x64xf32>, vector<64x64xf32> -> vector<64x64xf32>
    %41 = arith.addf %38, %40 : vector<64x64xf32>
    %c0_19 = arith.constant 0 : index
    %c0_20 = arith.constant 0 : index
    %42 = vector.load %arg4[%c0_19, %c0_20] : memref<1x64xf32, #tpu.memory_space<vmem>>, vector<1x64xf32>
    %43 = vector.broadcast %42 : vector<1x64xf32> to vector<64x64xf32>
    %44 = arith.addf %41, %43 : vector<64x64xf32>
    %c0_21 = arith.constant 0 : index
    %c0_22 = arith.constant 0 : index
    %45 = vector.load %arg5[%c0_21, %c0_22] : memref<64x64xf32, #tpu.memory_space<vmem>>, vector<64x64xf32>
    tpu.vector_store %arg5[%c0_21, %c0_22], %44 {strides = array<i32>} : memref<64x64xf32, #tpu.memory_space<vmem>>, vector<64x64xf32>,
    return
  }
  func.func @transform_0(%arg0: i32) -> (i32, i32, i32, i32) {
    %c0_i32 = arith.constant 0 : i32
    %c0_i32_0 = arith.constant 0 : i32
    %c0_i32_1 = arith.constant 0 : i32
    %c0_i32_2 = arith.constant 0 : i32
    return %arg0, %c0_i32, %c0_i32_0, %c0_i32_1 : i32, i32, i32, i32
  }
  func.func @transform_1(%arg0: i32) -> (i32, i32) {
    %c0_i32 = arith.constant 0 : i32
    %c0_i32_0 = arith.constant 0 : i32
    %c0_i32_1 = arith.constant 0 : i32
    return %c0_i32, %c0_i32_0 : i32, i32
  }
  func.func @transform_2(%arg0: i32) -> (i32, i32) {
    %c0_i32 = arith.constant 0 : i32
    %c0_i32_0 = arith.constant 0 : i32
    %c0_i32_1 = arith.constant 0 : i32
    return %c0_i32, %c0_i32_0 : i32, i32
  }
  func.func @transform_3(%arg0: i32) -> (i32, i32) {
    %c0_i32 = arith.constant 0 : i32
    %c0_i32_0 = arith.constant 0 : i32
    %c0_i32_1 = arith.constant 0 : i32
    return %c0_i32, %c0_i32_0 : i32, i32
  }
  func.func @transform_4(%arg0: i32) -> (i32, i32) {
    %c0_i32 = arith.constant 0 : i32
    %c0_i32_0 = arith.constant 0 : i32
    return %arg0, %c0_i32 : i32, i32
  }
}

</mosaic_0001>

<bundles_post_ra>
// kernel: patch_merging.1
= control target key start
LH: loop header
LB: loop body
LE: loop exit
PB: predicated region body
PF: predicated region fallthrough
CT: control target
= control target key end

     0   :  { %vm51_vm0 = vcmask 519168   ;;  %s1517_s0 = inlined_call_operand.vmem [shape: f32[16,2,4,64], index: 0, kind: input, shape index: {}]   ;;  %s1518_s1 = inlined_call_operand.vmem [shape: f32[64,64], index: 1, kind: input, shape index: {}]   ;;  %s1519_s2 = inlined_call_operand.vmem [shape: f32[64,64], index: 2, kind: input, shape index: {}]   ;;  %s1520_s3 = inlined_call_operand.vmem [shape: f32[1,64], index: 3, kind: input, shape index: {}]   ;;  %s1521_s4 = inlined_call_operand.hbm [shape: f32[64,64], index: 4, kind: output, shape index: {}]  }
   0x1   :  { %v1081_v0 = vld [vmem:[%s1517_s0 + $0x4] sm:$0xf]  ;;  %v1086_v1 = vld [vmem:[%s1517_s0] sm:$0xf]  ;;  %v1095_v4 = vld [vmem:[%s1517_s0 + $0xc] sm:$0xf] }
   0x2   :  { %v100_v2 = vsel %vm51_vm0, %v1081_v0, 0.0  ;;  %v52_v3 = vsel %vm51_vm0, %v1086_v1, 0.0  ;;  %v1100_v5 = vld [vmem:[%s1517_s0 + $0x8] sm:$0xf]  ;;  %v103_v6 = vsel %vm51_vm0, %v1095_v4, 0.0  ;;  %v164_v17 = vmul.f32 %v1086_v1, %v1086_v1 }
   0x3   :  { %101 = vadd.xlane.f32.xlu1 %v100_v2  ;;  %53 = vadd.xlane.f32.xlu0 %v52_v3  ;;  %v55_v7 = vsel %vm51_vm0, %v1100_v5, 0.0  ;;  %v1109_v8 = vld [vmem:[%s1517_s0 + $0x18] sm:$0xf]  ;;  %v1114_v9 = vld [vmem:[%s1517_s0 + $0x10] sm:$0xf]  ;;  %v165_v16 = vmul.f32 %v1100_v5, %v1100_v5  ;;  %v229_v20 = vmul.f32 %v1095_v4, %v1095_v4  ;;  %v228_v21 = vmul.f32 %v1081_v0, %v1081_v0 }
   0x4   :  { %v61_v10 = vsel %vm51_vm0, %v1109_v8, 0.0  ;;  %v58_v11 = vsel %vm51_vm0, %v1114_v9, 0.0  ;;  %v1123_v12 = vld [vmem:[%s1517_s0 + $0x1c] sm:$0xf]  ;;  %v1128_v13 = vld [vmem:[%s1517_s0 + $0x14] sm:$0xf]  ;;  %v167_v24 = vmul.f32 %v1109_v8, %v1109_v8  ;;  %v166_v25 = vmul.f32 %v1114_v9, %v1114_v9 }
   0x5   :  { %v109_v14 = vsel %vm51_vm0, %v1123_v12, 0.0  ;;  %v106_v15 = vsel %vm51_vm0, %v1128_v13, 0.0  ;;  %v183_v18 = vsel %vm51_vm0, %v165_v16, 0.0  ;;  %v180_v19 = vsel %vm51_vm0, %v164_v17, 0.0 }
   0x6   :  { %v247_v22 = vsel %vm51_vm0, %v229_v20, 0.0  ;;  %v244_v23 = vsel %vm51_vm0, %v228_v21, 0.0 }
   0x7   :  { %104 = vadd.xlane.f32.xlu1 %v103_v6  ;;  %56 = vadd.xlane.f32.xlu0 %v55_v7 }
   0xb   :  { %62 = vadd.xlane.f32.xlu1 %v61_v10  ;;  %59 = vadd.xlane.f32.xlu0 %v58_v11 }
   0xf   :  { %110 = vadd.xlane.f32.xlu1 %v109_v14  ;;  %107 = vadd.xlane.f32.xlu0 %v106_v15 }
  0x13   :  { %184 = vadd.xlane.f32.xlu1 %v183_v18  ;;  %181 = vadd.xlane.f32.xlu0 %v180_v19 }
  0x14   :  { %9 = vsyncpa [#allocation3], 0  ;;  %v189_v26 = vsel %vm51_vm0, %v167_v24, 0.0  ;;  %v186_v27 = vsel %vm51_vm0, %v166_v25, 0.0  ;;  %v231_v28 = vmul.f32 %v1123_v12, %v1123_v12  ;;  %v230_v29 = vmul.f32 %v1128_v13, %v1128_v13  ;;  %v1161_v32 = vld [vmem:[%s1517_s0 + $0x28] sm:$0xf] }
  0x15   :  { %v1166_v33 = vld [vmem:[%s1517_s0 + $0x20] sm:$0xf]  ;;  %v67_v34 = vsel %vm51_vm0, %v1161_v32, 0.0  ;;  %v1175_v36 = vld [vmem:[%s1517_s0 + $0x2c] sm:$0xf]  ;;  %v169_v48 = vmul.f32 %v1161_v32, %v1161_v32  ;;  %v494_v10 = vld [vmem:[%s1519_s2 + $0x10] sm:$0xff] }
  0x16   :  { %v253_v30 = vsel %vm51_vm0, %v231_v28, 0.0  ;;  %v250_v31 = vsel %vm51_vm0, %v230_v29, 0.0  ;;  %v64_v35 = vsel %vm51_vm0, %v1166_v33, 0.0  ;;  %v1180_v37 = vld [vmem:[%s1517_s0 + $0x24] sm:$0xf]  ;;  %v115_v38 = vsel %vm51_vm0, %v1175_v36, 0.0 }
  0x17   :  { %248 = vadd.xlane.f32.xlu1 %v247_v22  ;;  %245 = vadd.xlane.f32.xlu0 %v244_v23  ;;  %v112_v39 = vsel %vm51_vm0, %v1180_v37, 0.0  ;;  %v1189_v40 = vld [vmem:[%s1517_s0 + $0x38] sm:$0xf]  ;;  %v1194_v41 = vld [vmem:[%s1517_s0 + $0x30] sm:$0xf]  ;;  %v168_v49 = vmul.f32 %v1166_v33, %v1166_v33  ;;  %v195_v50 = vsel %vm51_vm0, %v169_v48, 0.0  ;;  %v233_v52 = vmul.f32 %v1175_v36, %v1175_v36 }
  0x18   :  { %v73_v42 = vsel %vm51_vm0, %v1189_v40, 0.0  ;;  %v70_v43 = vsel %vm51_vm0, %v1194_v41, 0.0  ;;  %v1203_v44 = vld [vmem:[%s1517_s0 + $0x3c] sm:$0xf]  ;;  %v1208_v45 = vld [vmem:[%s1517_s0 + $0x34] sm:$0xf]  ;;  %v232_v53 = vmul.f32 %v1180_v37, %v1180_v37  ;;  %v171_v56 = vmul.f32 %v1189_v40, %v1189_v40 }
  0x19   :  { %v121_v46 = vsel %vm51_vm0, %v1203_v44, 0.0  ;;  %v118_v47 = vsel %vm51_vm0, %v1208_v45, 0.0  ;;  %v192_v51 = vsel %vm51_vm0, %v168_v49, 0.0  ;;  %v259_v54 = vsel %vm51_vm0, %v233_v52, 0.0  ;;  %v492_v58 = vld [vmem:[%s1519_s2] sm:$0xff]  ;;  %v493_v59 = vld [vmem:[%s1519_s2 + $0x8] sm:$0xff] }
  0x1a   :  { %v256_v55 = vsel %vm51_vm0, %v232_v53, 0.0  ;;  %v170_v57 = vmul.f32 %v1194_v41, %v1194_v41  ;;  %v484_v60 = vld [vmem:[%s1518_s1] sm:$0xff]  ;;  %v951_v61 = vpack.c.bf16 %v493_v59, %v492_v58  ;;  %v485_v62 = vld [vmem:[%s1518_s1 + $0x8] sm:$0xff]  ;;  %v201_v2 = vsel %vm51_vm0, %v171_v56, 0.0  ;;  %v495_v11 = vld [vmem:[%s1519_s2 + $0x18] sm:$0xff] }
  0x1b   :  { %190 = vadd.xlane.f32.xlu1 %v189_v26  ;;  %187 = vadd.xlane.f32.xlu0 %v186_v27  ;;  %v967_v63 = vpack.c.bf16 %v485_v62, %v484_v60  ;;  %v235_v6 = vmul.f32 %v1203_v44, %v1203_v44  ;;  %v234_v7 = vmul.f32 %v1208_v45, %v1208_v45  ;;  %v486_v14 = vld [vmem:[%s1518_s1 + $0x10] sm:$0xff]  ;;  %v487_v16 = vld [vmem:[%s1518_s1 + $0x18] sm:$0xff]  ;;  %v496_v20 = vld [vmem:[%s1519_s2 + $0x20] sm:$0xff]  ;;  %vm524_vm1 = vcmask 523264  }
  0x1c   :  { %v198_v3 = vsel %vm51_vm0, %v170_v57, 0.0  ;;  %952 = vmatprep.subr.bf16.mxu1 %v951_v61  ;;  %v955_v15 = vpack.c.bf16 %v495_v11, %v494_v10  ;;  %v971_v17 = vpack.c.bf16 %v487_v16, %v486_v14  ;;  %v497_v21 = vld [vmem:[%s1519_s2 + $0x28] sm:$0xff]  ;;  %v488_v22 = vld [vmem:[%s1518_s1 + $0x20] sm:$0xff]  ;;  %v1317_v48 = vld [vmem:[%s1517_s0 + $0x58] sm:$0xf] }
  0x1d   :  { %968 = vmatprep.subr.bf16.mxu0 %v967_v63  ;;  %954 = vmatpush3.bf16.msra.mxu1 %v951_v61  ;;  %v265_v18 = vsel %vm51_vm0, %v235_v6, 0.0  ;;  %v262_v19 = vsel %vm51_vm0, %v234_v7, 0.0  ;;  %v1274_v23 = vld [vmem:[%s1517_s0 + $0x48] sm:$0xf]  ;;  %v1279_v24 = vld [vmem:[%s1517_s0 + $0x40] sm:$0xf]  ;;  %v959_v25 = vpack.c.bf16 %v497_v21, %v496_v20 }
  0x1e   :  { %970 = vmatpush3.bf16.msra.mxu0 %v967_v63  ;;  %956 = vmatprep.subr.bf16.mxu1 %v955_v15  ;;  %v489_v26 = vld [vmem:[%s1518_s1 + $0x28] sm:$0xff]  ;;  %v79_v28 = vsel %vm51_vm0, %v1274_v23, 0.0  ;;  %v76_v29 = vsel %vm51_vm0, %v1279_v24, 0.0  ;;  %v1322_v49 = vld [vmem:[%s1517_s0 + $0x50] sm:$0xf]  ;;  %v173_v56 = vmul.f32 %v1274_v23, %v1274_v23  ;;  %v172_v57 = vmul.f32 %v1279_v24, %v1279_v24 }
  0x1f   :  { %254 = vadd.xlane.f32.xlu1 %v253_v30  ;;  %251 = vadd.xlane.f32.xlu0 %v250_v31  ;;  %v975_v27 = vpack.c.bf16 %v489_v26, %v488_v22  ;;  %v498_v30 = vld [vmem:[%s1519_s2 + $0x30] sm:$0xff]  ;;  %v499_v31 = vld [vmem:[%s1519_s2 + $0x38] sm:$0xff]  ;;  %v1369_v16 = vld [vmem:[%s1517_s0 + $0x68] sm:$0xf] }
  0x20   :  { %972 = vmatprep.subr.bf16.mxu0 %v971_v17  ;;  %v1331_v52 = vld [vmem:[%s1517_s0 + $0x5c] sm:$0xf]  ;;  %v1336_v53 = vld [vmem:[%s1517_s0 + $0x54] sm:$0xf]  ;;  %v207_v58 = vsel %vm51_vm0, %v173_v56, 0.0  ;;  %v204_v59 = vsel %vm51_vm0, %v172_v57, 0.0 }
  0x21   :  { %958 = vmatpush3.bf16.msra.mxu1 %v955_v15  ;;  %v239_v10 = vmul.f32 %v1331_v52, %v1331_v52  ;;  %v238_v11 = vmul.f32 %v1336_v53, %v1336_v53  ;;  %v1383_v20 = vld [vmem:[%s1517_s0 + $0x6c] sm:$0xf]  ;;  %v1388_v21 = vld [vmem:[%s1517_s0 + $0x64] sm:$0xf]  ;;  %v1397_v26 = vld [vmem:[%s1517_s0 + $0x78] sm:$0xf] }
  0x22   :  { %974 = vmatpush3.bf16.msra.mxu0 %v971_v17  ;;  %960 = vmatprep.subr.bf16.mxu1 %v959_v25  ;;  %v1374_v17 = vld [vmem:[%s1517_s0 + $0x60] sm:$0xf]  ;;  %v139_v22 = vsel %vm51_vm0, %v1383_v20, 0.0  ;;  %v179_v56 = vmul.f32 %v1397_v26, %v1397_v26 }
  0x23   :  { %68 = vadd.xlane.f32.xlu1 %v67_v34  ;;  %65 = vadd.xlane.f32.xlu0 %v64_v35  ;;  %v490_v34 = vld [vmem:[%s1518_s1 + $0x30] sm:$0xff]  ;;  %v1300_v35 = vld [vmem:[%s1517_s0 + $0x4c] sm:$0xf]  ;;  %v277_v14 = vsel %vm51_vm0, %v239_v10, 0.0  ;;  %v274_v15 = vsel %vm51_vm0, %v238_v11, 0.0 }
  0x24   :  { %976 = vmatprep.subr.bf16.mxu0 %v975_v27  ;;  %v237_v60 = vmul.f32 %v1300_v35, %v1300_v35 }
  0x25   :  { %962 = vmatpush3.bf16.msra.mxu1 %v959_v25  ;;  %v136_v25 = vsel %vm51_vm0, %v1388_v21, 0.0 }
  0x26   :  { %978 = vmatpush3.bf16.msra.mxu0 %v975_v27  ;;  %v271_v62 = vsel %vm51_vm0, %v237_v60, 0.0  ;;  %v1402_v27 = vld [vmem:[%s1517_s0 + $0x70] sm:$0xf] }
  0x27   :  { %116 = vadd.xlane.f32.xlu1 %v115_v38  ;;  %113 = vadd.xlane.f32.xlu0 %v112_v39  ;;  %v1305_v38 = vld [vmem:[%s1517_s0 + $0x44] sm:$0xf]  ;;  %v963_v39 = vpack.c.bf16 %v499_v31, %v498_v30  ;;  %v1411_v30 = vld [vmem:[%s1517_s0 + $0x7c] sm:$0xf]  ;;  %v1416_v31 = vld [vmem:[%s1517_s0 + $0x74] sm:$0xf]  ;;  %v178_v57 = vmul.f32 %v1402_v27, %v1402_v27 }
  0x28   :  { %v236_v61 = vmul.f32 %v1305_v38, %v1305_v38  ;;  %v243_v60 = vmul.f32 %v1411_v30, %v1411_v30 }
  0x29   :  { %964 = vmatprep.subr.bf16.mxu1 %v963_v39 }
  0x2a   :  { %966 = vmatpush3.bf16.msra.mxu1 %v963_v39  ;;  %v268_v63 = vsel %vm51_vm0, %v236_v61, 0.0  ;;  %v142_v39 = vsel %vm51_vm0, %v1416_v31, 0.0  ;;  %v242_v61 = vmul.f32 %v1416_v31, %v1416_v31 }
  0x2b   :  { %74 = vadd.xlane.f32.xlu1 %v73_v42  ;;  %71 = vadd.xlane.f32.xlu0 %v70_v43  ;;  %v491_v42 = vld [vmem:[%s1518_s1 + $0x38] sm:$0xff] }
  0x2c   :  { %v979_v43 = vpack.c.bf16 %v491_v42, %v490_v34  ;;  %v145_v34 = vsel %vm51_vm0, %v1411_v30, 0.0  ;;  %v177_v42 = vmul.f32 %v1369_v16, %v1369_v16 }
  0x2e   :  { %980 = vmatprep.subr.bf16.mxu0 %v979_v43 }
  0x2f   :  { %122 = vadd.xlane.f32.xlu1 %v121_v46  ;;  %119 = vadd.xlane.f32.xlu0 %v118_v47  ;;  %v127_v46 = vsel %vm51_vm0, %v1300_v35, 0.0  ;;  %v124_v47 = vsel %vm51_vm0, %v1305_v38, 0.0 }
  0x30   :  { %982 = vmatpush3.bf16.msra.mxu0 %v979_v43  ;;  %v176_v43 = vmul.f32 %v1374_v17, %v1374_v17 }
  0x33   :  { %196 = vadd.xlane.f32.xlu1 %v195_v50  ;;  %193 = vadd.xlane.f32.xlu0 %v192_v51  ;;  %v85_v50 = vsel %vm51_vm0, %v1317_v48, 0.0  ;;  %v82_v51 = vsel %vm51_vm0, %v1322_v49, 0.0 }
  0x37   :  { %260 = vadd.xlane.f32.xlu1 %v259_v54  ;;  %257 = vadd.xlane.f32.xlu0 %v256_v55  ;;  %v133_v54 = vsel %vm51_vm0, %v1331_v52, 0.0  ;;  %v130_v55 = vsel %vm51_vm0, %v1336_v53, 0.0 }
  0x3b   :  { %202 = vadd.xlane.f32.xlu1 %v201_v2  ;;  %199 = vadd.xlane.f32.xlu0 %v198_v3  ;;  %v175_v2 = vmul.f32 %v1317_v48, %v1317_v48  ;;  %v174_v3 = vmul.f32 %v1322_v49, %v1322_v49 }
  0x3d   :  { %v213_v6 = vsel %vm51_vm0, %v175_v2, 0.0  ;;  %v210_v7 = vsel %vm51_vm0, %v174_v3, 0.0 }
  0x3f   :  { %266 = vadd.xlane.f32.xlu1 %v265_v18  ;;  %263 = vadd.xlane.f32.xlu0 %v262_v19  ;;  %v91_v18 = vsel %vm51_vm0, %v1369_v16, 0.0  ;;  %v88_v19 = vsel %vm51_vm0, %v1374_v17, 0.0 }
  0x43   :  { %80 = vadd.xlane.f32.xlu1 %v79_v28  ;;  %77 = vadd.xlane.f32.xlu0 %v76_v29  ;;  %v97_v28 = vsel %vm51_vm0, %v1397_v26, 0.0  ;;  %v94_v29 = vsel %vm51_vm0, %v1402_v27, 0.0 }
  0x47   :  { %128 = vadd.xlane.f32.xlu1 %v127_v46  ;;  %125 = vadd.xlane.f32.xlu0 %v124_v47  ;;  %v219_v46 = vsel %vm51_vm0, %v177_v42, 0.0  ;;  %v216_v47 = vsel %vm51_vm0, %v176_v43, 0.0 }
  0x4b   :  { %86 = vadd.xlane.f32.xlu1 %v85_v50  ;;  %83 = vadd.xlane.f32.xlu0 %v82_v51  ;;  %v241_v50 = vmul.f32 %v1383_v20, %v1383_v20  ;;  %v240_v51 = vmul.f32 %v1388_v21, %v1388_v21 }
  0x4f   :  { %134 = vadd.xlane.f32.xlu1 %v133_v54  ;;  %131 = vadd.xlane.f32.xlu0 %v130_v55  ;;  %v283_v54 = vsel %vm51_vm0, %v241_v50, 0.0  ;;  %v280_v55 = vsel %vm51_vm0, %v240_v51, 0.0 }
  0x53   :  { %208 = vadd.xlane.f32.xlu1 %v207_v58  ;;  %205 = vadd.xlane.f32.xlu0 %v204_v59  ;;  %v225_v58 = vsel %vm51_vm0, %v179_v56, 0.0  ;;  %v222_v59 = vsel %vm51_vm0, %v178_v57, 0.0 }
  0x57   :  { %272 = vadd.xlane.f32.xlu1 %v271_v62  ;;  %269 = vadd.xlane.f32.xlu0 %v268_v63  ;;  %v289_v62 = vsel %vm51_vm0, %v243_v60, 0.0  ;;  %v286_v63 = vsel %vm51_vm0, %v242_v61, 0.0 }
  0x5b   :  { %214 = vadd.xlane.f32.xlu1 %v213_v6  ;;  %211 = vadd.xlane.f32.xlu0 %v210_v7 }
  0x5f   :  { %278 = vadd.xlane.f32.xlu1 %v277_v14  ;;  %275 = vadd.xlane.f32.xlu0 %v274_v15 }
  0x63   :  { %92 = vadd.xlane.f32.xlu1 %v91_v18  ;;  %89 = vadd.xlane.f32.xlu0 %v88_v19 }
  0x67   :  { %140 = vadd.xlane.f32.xlu1 %v139_v22  ;;  %137 = vadd.xlane.f32.xlu0 %v136_v25 }
  0x6b   :  { %98 = vadd.xlane.f32.xlu1 %v97_v28  ;;  %95 = vadd.xlane.f32.xlu0 %v94_v29 }
  0x6f   :  { %146 = vadd.xlane.f32.xlu1 %v145_v34  ;;  %143 = vadd.xlane.f32.xlu0 %v142_v39 }
  0x73   :  { %220 = vadd.xlane.f32.xlu1 %v219_v46  ;;  %217 = vadd.xlane.f32.xlu0 %v216_v47 }
  0x77   :  { %284 = vadd.xlane.f32.xlu1 %v283_v54  ;;  %281 = vadd.xlane.f32.xlu0 %v280_v55 }
  0x7b   :  { %226 = vadd.xlane.f32.xlu1 %v225_v58  ;;  %223 = vadd.xlane.f32.xlu0 %v222_v59 }
  0x7f   :  { %290 = vadd.xlane.f32.xlu1 %v289_v62  ;;  %287 = vadd.xlane.f32.xlu0 %v286_v63 }
  0x90   :  { %v102_v2 = vpop.xlane.xlu1 %101  ;;  %v54_v3 = vpop.xlane.xlu0 %53 }
  0x91   :  { %v148_v18 = vadd.f32 %v102_v2, %v54_v3 }
  0x93   :  { %v308_v28 = vmul.f32 0.0078125, %v148_v18 }
  0x94   :  { %v105_v6 = vpop.xlane.xlu1 %104  ;;  %v57_v7 = vpop.xlane.xlu0 %56 }
  0x95   :  { %v149_v19 = vadd.f32 %v105_v6, %v57_v7  ;;  %v340_v47 = vmul.f32 %v308_v28, %v308_v28 }
  0x97   :  { %v309_v29 = vmul.f32 0.0078125, %v149_v19 }
  0x98   :  { %v63_v10 = vpop.xlane.xlu1 %62  ;;  %v60_v11 = vpop.xlane.xlu0 %59 }
  0x99   :  { %v341_v54 = vmul.f32 %v309_v29, %v309_v29 }
  0x9c   :  { %v111_v14 = vpop.xlane.xlu1 %110  ;;  %v108_v15 = vpop.xlane.xlu0 %107 }
  0x9d   :  { %v151_v46 = vadd.f32 %v111_v14, %v63_v10  ;;  %v150_v50 = vadd.f32 %v108_v15, %v60_v11 }
  0x9f   :  { %v311_v60 = vmul.f32 0.0078125, %v151_v46  ;;  %v310_v61 = vmul.f32 0.0078125, %v150_v50 }
  0xa0   :  { %v185_v22 = vpop.xlane.xlu1 %184  ;;  %v182_v25 = vpop.xlane.xlu0 %181 }
  0xa1   :  { %v343_v10 = vmul.f32 %v311_v60, %v311_v60  ;;  %v342_v14 = vmul.f32 %v310_v61, %v310_v61 }
  0xa4   :  { %v249_v34 = vpop.xlane.xlu1 %248  ;;  %v246_v39 = vpop.xlane.xlu0 %245 }
  0xa5   :  { %v293_v42 = vadd.f32 %v249_v34, %v185_v22  ;;  %v292_v43 = vadd.f32 %v246_v39, %v182_v25 }
  0xa7   :  { %v325_v51 = vmul.f32 0.0078125, %v293_v42  ;;  %v324_v55 = vmul.f32 0.0078125, %v292_v43 }
  0xa8   :  { %v191_v56 = vpop.xlane.xlu1 %190  ;;  %v188_v57 = vpop.xlane.xlu0 %187 }
  0xa9   :  { %v357_v58 = vsub.f32 %v325_v51, %v341_v54  ;;  %v356_v59 = vsub.f32 %v324_v55, %v340_v47 }
  0xab   :  { %v373_v62 = vmax.f32 %v357_v58, 0.0  ;;  %v372_v63 = vmax.f32 %v356_v59, 0.0  ;;  %v452_v59 = vsub.f32 %v1081_v0, %v308_v28  ;;  %v423_v0 = vsub.f32 %v1109_v8, %v311_v60 }
  0xac   :  { %v255_v2 = vpop.xlane.xlu1 %254  ;;  %v252_v3 = vpop.xlane.xlu0 %251 }
  0xad   :  { %v389_v6 = vadd.f32 1e-05, %v373_v62  ;;  %v388_v7 = vadd.f32 1e-05, %v372_v63  ;;  %v295_v18 = vadd.f32 %v255_v2, %v191_v56  ;;  %v294_v19 = vadd.f32 %v252_v3, %v188_v57 }
  0xae   :  { %v453_v56 = vsub.f32 %v1095_v4, %v309_v29  ;;  %v421_v57 = vsub.f32 %v1100_v5, %v309_v29  ;;  %v420_v62 = vsub.f32 %v1086_v1, %v308_v28  ;;  %v455_v1 = vsub.f32 %v1123_v12, %v311_v60 }
  0xaf   :  { %994 = vrsqrt.f32 %v389_v6  ;;  %v327_v11 = vmul.f32 0.0078125, %v295_v18  ;;  %v326_v15 = vmul.f32 0.0078125, %v294_v19  ;;  %v422_v29 = vsub.f32 %v1114_v9, %v310_v61 }
  0xb0   :  { %996 = vrsqrt.f32 %v388_v7  ;;  %v69_v22 = vpop.xlane.xlu1 %68  ;;  %v66_v25 = vpop.xlane.xlu0 %65 }
  0xb1   :  { %v359_v34 = vsub.f32 %v327_v11, %v343_v10  ;;  %v358_v39 = vsub.f32 %v326_v15, %v342_v14 }
  0xb3   :  { %v375_v42 = vmax.f32 %v359_v34, 0.0  ;;  %v374_v43 = vmax.f32 %v358_v39, 0.0  ;;  %v454_v34 = vsub.f32 %v1128_v13, %v310_v61 }
  0xb4   :  { %v117_v46 = vpop.xlane.xlu1 %116  ;;  %v114_v47 = vpop.xlane.xlu0 %113 }
  0xb5   :  { %v391_v50 = vadd.f32 1e-05, %v375_v42  ;;  %v390_v51 = vadd.f32 1e-05, %v374_v43  ;;  %v153_v14 = vadd.f32 %v117_v46, %v69_v22  ;;  %v152_v15 = vadd.f32 %v114_v47, %v66_v25 }
  0xb7   :  { %998 = vrsqrt.f32 %v391_v50  ;;  %v313_v42 = vmul.f32 0.0078125, %v153_v14  ;;  %v312_v25 = vmul.f32 0.0078125, %v152_v15 }
  0xb8   :  { %1000 = vrsqrt.f32 %v390_v51  ;;  %v75_v54 = vpop.xlane.xlu1 %74  ;;  %v72_v55 = vpop.xlane.xlu0 %71 }
  0xb9   :  { %v995_v58 = vpop.eup %994  ;;  %v344_v9 = vmul.f32 %v312_v25, %v312_v25 }
  0xba   :  { %v997_v63 = vpop.eup %996  ;;  %v469_v2 = vmul.f32 %v995_v58, %v453_v56  ;;  %v437_v3 = vmul.f32 %v995_v58, %v421_v57  ;;  %v345_v58 = vmul.f32 %v313_v42, %v313_v42 }
  0xbb   :  { %v468_v6 = vmul.f32 %v997_v63, %v452_v59  ;;  %v436_v7 = vmul.f32 %v997_v63, %v420_v62 }
  0xbc   :  { %v123_v18 = vpop.xlane.xlu1 %122  ;;  %v120_v19 = vpop.xlane.xlu0 %119 }
  0xbd   :  { %v516_v10 = vcombine.low %v468_v6, %v469_v2  ;;  %v662_v11 = vcombine.low %v436_v7, %v437_v3  ;;  %v155_v60 = vadd.f32 %v123_v18, %v75_v54  ;;  %v154_v59 = vadd.f32 %v120_v19, %v72_v55 }
  0xbf   :  { %911 = vmatprep.mubr.msk.f32.mxu1 %vm524_vm1, %v516_v10  ;;  %939 = vmatprep.mubr.msk.f32.mxu0 %vm524_vm1, %v662_v11  ;;  %v315_v6 = vmul.f32 0.0078125, %v155_v60  ;;  %v314_v7 = vmul.f32 0.0078125, %v154_v59  ;;  %v456_v59 = vsub.f32 %v1180_v37, %v312_v25 }
  0xc0   :  { %v197_v4 = vpop.xlane.xlu1 %196  ;;  %v194_v5 = vpop.xlane.xlu0 %193 }
  0xc1   :  { %v999_v28 = vpop.eup %998 }
  0xc2   :  { %v1001_v39 = vpop.eup %1000  ;;  %v471_v43 = vmul.f32 %v999_v28, %v455_v1  ;;  %v439_v22 = vmul.f32 %v999_v28, %v423_v0  ;;  %v347_v0 = vmul.f32 %v315_v6, %v315_v6 }
  0xc3   :  { %v470_v46 = vmul.f32 %v1001_v39, %v454_v34  ;;  %v438_v47 = vmul.f32 %v1001_v39, %v422_v29 }
  0xc4   :  { %v261_v50 = vpop.xlane.xlu1 %260  ;;  %v258_v51 = vpop.xlane.xlu0 %257 }
  0xc5   :  { %v297_v56 = vadd.f32 %v261_v50, %v197_v4  ;;  %v296_v8 = vadd.f32 %v258_v51, %v194_v5  ;;  %v517_v57 = vcombine.low %v470_v46, %v471_v43  ;;  %v663_v12 = vcombine.low %v438_v47, %v439_v22 }
  0xc6   :  { %v346_v4 = vmul.f32 %v314_v7, %v314_v7 }
  0xc7   :  { %v329_v62 = vmul.f32 0.0078125, %v297_v56  ;;  %v328_v63 = vmul.f32 0.0078125, %v296_v8  ;;  %912 = vmatmul.mubr.msk.f32.vlgmr.msra.gmra.mrb[0].mxu1 %vm524_vm1, %v517_v57  ;;  %940 = vmatmul.mubr.msk.f32.vlgmr.msra.gmra.mrb[0].mxu0 %vm524_vm1, %v663_v12  ;;  %v425_v56 = vsub.f32 %v1161_v32, %v313_v42  ;;  %v457_v8 = vsub.f32 %v1175_v36, %v313_v42 }
  0xc8   :  { %v203_v13 = vpop.xlane.xlu1 %202  ;;  %v200_v61 = vpop.xlane.xlu0 %199  ;;  %v427_v36 = vsub.f32 %v1189_v40, %v315_v6 }
  0xc9   :  { %v361_v2 = vsub.f32 %v329_v62, %v345_v58  ;;  %v360_v3 = vsub.f32 %v328_v63, %v344_v9  ;;  %v424_v58 = vsub.f32 %v1166_v33, %v312_v25  ;;  %v459_v33 = vsub.f32 %v1203_v44, %v315_v6 }
  0xcb   :  { %v377_v10 = vmax.f32 %v361_v2, 0.0  ;;  %v376_v11 = vmax.f32 %v360_v3, 0.0 }
  0xcc   :  { %v267_v14 = vpop.xlane.xlu1 %266  ;;  %v264_v15 = vpop.xlane.xlu0 %263 }
  0xcd   :  { %v393_v54 = vadd.f32 1e-05, %v377_v10  ;;  %v392_v18 = vadd.f32 1e-05, %v376_v11  ;;  %v299_v55 = vadd.f32 %v267_v14, %v203_v13  ;;  %v298_v19 = vadd.f32 %v264_v15, %v200_v61 }
  0xce   :  { %v426_v15 = vsub.f32 %v1194_v41, %v314_v7 }
  0xcf   :  { %1002 = vrsqrt.f32 %v393_v54  ;;  %v331_v1 = vmul.f32 0.0078125, %v299_v55  ;;  %v330_v5 = vmul.f32 0.0078125, %v298_v19  ;;  %v458_v54 = vsub.f32 %v1208_v45, %v314_v7 }
  0xd0   :  { %1004 = vrsqrt.f32 %v392_v18  ;;  %v81_v28 = vpop.xlane.xlu1 %80  ;;  %v78_v29 = vpop.xlane.xlu0 %77 }
  0xd1   :  { %v363_v34 = vsub.f32 %v331_v1, %v347_v0  ;;  %v362_v39 = vsub.f32 %v330_v5, %v346_v4 }
  0xd3   :  { %v379_v43 = vmax.f32 %v363_v34, 0.0  ;;  %v378_v22 = vmax.f32 %v362_v39, 0.0 }
  0xd4   :  { %v129_v46 = vpop.xlane.xlu1 %128  ;;  %v126_v47 = vpop.xlane.xlu0 %125 }
  0xd5   :  { %v395_v50 = vadd.f32 1e-05, %v379_v43  ;;  %v394_v51 = vadd.f32 1e-05, %v378_v22  ;;  %v157_v32 = vadd.f32 %v129_v46, %v81_v28  ;;  %v156_v14 = vadd.f32 %v126_v47, %v78_v29 }
  0xd7   :  { %1006 = vrsqrt.f32 %v395_v50  ;;  %v317_v55 = vmul.f32 0.0078125, %v157_v32  ;;  %v316_v1 = vmul.f32 0.0078125, %v156_v14 }
  0xd8   :  { %1008 = vrsqrt.f32 %v394_v51  ;;  %v87_v57 = vpop.xlane.xlu1 %86  ;;  %v84_v12 = vpop.xlane.xlu0 %83 }
  0xd9   :  { %v1003_v60 = vpop.eup %1002  ;;  %v349_v43 = vmul.f32 %v317_v55, %v317_v55  ;;  %v348_v41 = vmul.f32 %v316_v1, %v316_v1 }
  0xda   :  { %v1005_v62 = vpop.eup %1004  ;;  %v473_v9 = vmul.f32 %v1003_v60, %v457_v8  ;;  %v441_v63 = vmul.f32 %v1003_v60, %v425_v56 }
  0xdb   :  { %v472_v13 = vmul.f32 %v1005_v62, %v456_v59  ;;  %v440_v61 = vmul.f32 %v1005_v62, %v424_v58 }
  0xdc   :  { %v135_v2 = vpop.xlane.xlu1 %134  ;;  %v132_v3 = vpop.xlane.xlu0 %131 }
  0xdd   :  { %v518_v10 = vcombine.low %v472_v13, %v473_v9  ;;  %v664_v11 = vcombine.low %v440_v61, %v441_v63  ;;  %v159_v6 = vadd.f32 %v135_v2, %v87_v57  ;;  %v158_v22 = vadd.f32 %v132_v3, %v84_v12 }
  0xdf   :  { %914 = vmatprep.mubr.msk.f32.mxu1 %vm524_vm1, %v518_v10  ;;  %942 = vmatprep.mubr.msk.f32.mxu0 %vm524_vm1, %v664_v11  ;;  %v319_v56 = vmul.f32 0.0078125, %v159_v6  ;;  %v318_v8 = vmul.f32 0.0078125, %v158_v22 }
  0xe0   :  { %v209_v37 = vpop.xlane.xlu1 %208  ;;  %v206_v42 = vpop.xlane.xlu0 %205 }
  0xe1   :  { %v1007_v25 = vpop.eup %1006  ;;  %v351_v13 = vmul.f32 %v319_v56, %v319_v56  ;;  %v350_v2 = vmul.f32 %v318_v8, %v318_v8 }
  0xe2   :  { %v1009_v18 = vpop.eup %1008  ;;  %v475_v19 = vmul.f32 %v1007_v25, %v459_v33  ;;  %v443_v0 = vmul.f32 %v1007_v25, %v427_v36 }
  0xe3   :  { %v474_v4 = vmul.f32 %v1009_v18, %v458_v54  ;;  %v442_v5 = vmul.f32 %v1009_v18, %v426_v15  ;;  %v429_v54 = vsub.f32 %v1274_v23, %v317_v55  ;;  %v461_v18 = vsub.f32 %v1300_v35, %v317_v55 }
  0xe4   :  { %v273_v28 = vpop.xlane.xlu1 %272  ;;  %v270_v29 = vpop.xlane.xlu0 %269  ;;  %v431_v35 = vsub.f32 %v1317_v48, %v319_v56 }
  0xe5   :  { %v301_v34 = vadd.f32 %v273_v28, %v209_v37  ;;  %v300_v40 = vadd.f32 %v270_v29, %v206_v42  ;;  %v519_v39 = vcombine.low %v474_v4, %v475_v19  ;;  %v665_v44 = vcombine.low %v442_v5, %v443_v0 }
  0xe6   :  { %v428_v5 = vsub.f32 %v1279_v24, %v316_v1  ;;  %v460_v28 = vsub.f32 %v1305_v38, %v316_v1  ;;  %v463_v24 = vsub.f32 %v1331_v52, %v319_v56 }
  0xe7   :  { %v333_v46 = vmul.f32 0.0078125, %v301_v34  ;;  %v332_v47 = vmul.f32 0.0078125, %v300_v40  ;;  %915 = vmatmul.mubr.msk.f32.gmra.mrb[2].mxu1 %vm524_vm1, %v519_v39  ;;  %943 = vmatmul.mubr.msk.f32.gmra.mrb[2].mxu0 %vm524_vm1, %v665_v44 }
  0xe8   :  { %v215_v45 = vpop.xlane.xlu1 %214  ;;  %v212_v7 = vpop.xlane.xlu0 %211 }
  0xe9   :  { %v365_v50 = vsub.f32 %v333_v46, %v349_v43  ;;  %v364_v51 = vsub.f32 %v332_v47, %v348_v41  ;;  %v430_v47 = vsub.f32 %v1322_v49, %v318_v8 }
  0xeb   :  { %v381_v60 = vmax.f32 %v365_v50, 0.0  ;;  %v380_v58 = vmax.f32 %v364_v51, 0.0 }
  0xec   :  { %v279_v59 = vpop.xlane.xlu1 %278  ;;  %v276_v62 = vpop.xlane.xlu0 %275 }
  0xed   :  { %v397_v57 = vadd.f32 1e-05, %v381_v60  ;;  %v396_v9 = vadd.f32 1e-05, %v380_v58  ;;  %v303_v12 = vadd.f32 %v279_v59, %v215_v45  ;;  %v302_v63 = vadd.f32 %v276_v62, %v212_v7 }
  0xee   :  { %v462_v45 = vsub.f32 %v1336_v53, %v318_v8 }
  0xef   :  { %1010 = vrsqrt.f32 %v397_v57  ;;  %v335_v61 = vmul.f32 0.0078125, %v303_v12  ;;  %v334_v3 = vmul.f32 0.0078125, %v302_v63 }
  0xf0   :  { %1012 = vrsqrt.f32 %v396_v9  ;;  %v93_v10 = vpop.xlane.xlu1 %92  ;;  %v90_v11 = vpop.xlane.xlu0 %89 }
  0xf1   :  { %v367_v32 = vsub.f32 %v335_v61, %v351_v13  ;;  %v366_v14 = vsub.f32 %v334_v3, %v350_v2 }
  0xf3   :  { %v383_v36 = vmax.f32 %v367_v32, 0.0  ;;  %v382_v33 = vmax.f32 %v366_v14, 0.0 }
  0xf4   :  { %v141_v37 = vpop.xlane.xlu1 %140  ;;  %v138_v42 = vpop.xlane.xlu0 %137 }
  0xf5   :  { %v399_v25 = vadd.f32 1e-05, %v383_v36  ;;  %v398_v15 = vadd.f32 1e-05, %v382_v33  ;;  %v161_v23 = vadd.f32 %v141_v37, %v93_v10  ;;  %v160_v41 = vadd.f32 %v138_v42, %v90_v11 }
  0xf7   :  { %1014 = vrsqrt.f32 %v399_v25  ;;  %v321_v50 = vmul.f32 0.0078125, %v161_v23  ;;  %v320_v58 = vmul.f32 0.0078125, %v160_v41 }
  0xf8   :  { %1016 = vrsqrt.f32 %v398_v15  ;;  %v99_v19 = vpop.xlane.xlu1 %98  ;;  %v96_v0 = vpop.xlane.xlu0 %95 }
  0xf9   :  { %v1011_v4 = vpop.eup %1010  ;;  %v353_v13 = vmul.f32 %v321_v50, %v321_v50  ;;  %v352_v49 = vmul.f32 %v320_v58, %v320_v58  ;;  %v464_v23 = vsub.f32 %v1388_v21, %v320_v58 }
  0xfa   :  { %v1013_v29 = vpop.eup %1012  ;;  %v477_v34 = vmul.f32 %v1011_v4, %v461_v18  ;;  %v445_v40 = vmul.f32 %v1011_v4, %v429_v54 }
  0xfb   :  { %v476_v39 = vmul.f32 %v1013_v29, %v460_v28  ;;  %v444_v44 = vmul.f32 %v1013_v29, %v428_v5 }
  0xfc   :  { %v147_v6 = vpop.xlane.xlu1 %146  ;;  %v144_v43 = vpop.xlane.xlu0 %143 }
  0xfd   :  { %v520_v22 = vcombine.low %v476_v39, %v477_v34  ;;  %v666_v46 = vcombine.low %v444_v44, %v445_v40  ;;  %v163_v56 = vadd.f32 %v147_v6, %v99_v19  ;;  %v162_v61 = vadd.f32 %v144_v43, %v96_v0 }
  0xfe   :  { %v433_v6 = vsub.f32 %v1369_v16, %v321_v50  ;;  %v465_v43 = vsub.f32 %v1383_v20, %v321_v50 }
  0xff   :  { %917 = vmatprep.mubr.msk.f32.mxu1 %vm524_vm1, %v520_v22  ;;  %945 = vmatprep.mubr.msk.f32.mxu0 %vm524_vm1, %v666_v46  ;;  %v323_v32 = vmul.f32 0.0078125, %v163_v56  ;;  %v322_v14 = vmul.f32 0.0078125, %v162_v61  ;;  %v432_v46 = vsub.f32 %v1374_v17, %v320_v58 }
 0x100   :  { %v221_v38 = vpop.xlane.xlu1 %220  ;;  %v218_v55 = vpop.xlane.xlu0 %217 }
 0x101   :  { %v1015_v1 = vpop.eup %1014  ;;  %v355_v19 = vmul.f32 %v323_v32, %v323_v32  ;;  %v354_v4 = vmul.f32 %v322_v14, %v322_v14  ;;  %v435_v16 = vsub.f32 %v1397_v26, %v323_v32  ;;  %v467_v20 = vsub.f32 %v1411_v30, %v323_v32  ;;  %v862_v30 = vld [vmem:[%s1520_s3] ss:$0 sm:$0xff]  ;;  %s1050_s3 = smov [#allocation2]  }
 0x102   :  { %v1017_v7 = vpop.eup %1016  ;;  %v479_v51 = vmul.f32 %v1015_v1, %v463_v24  ;;  %v447_v60 = vmul.f32 %v1015_v1, %v431_v35  ;;  %v434_v17 = vsub.f32 %v1402_v27, %v322_v14  ;;  %v466_v21 = vsub.f32 %v1416_v31, %v322_v14  ;;  %s819_s6 = sshll.u32 %s1050_s3, 4  ;;  %s820_s6 = int_to_ptr.vmem [resolvable:$true] %s819_s6 }
 0x103   :  { %v478_v59 = vmul.f32 %v1017_v7, %v462_v45  ;;  %v446_v62 = vmul.f32 %v1017_v7, %v430_v47  ;;  %s1026_s7 = scalar_lea.vmem %s820_s6, 1024  ;;  %p1031_p1 = scmp.lt.s32.totalorder %s820_s6, %s820_s6 }
 0x104   :  { %v285_v57 = vpop.xlane.xlu1 %284  ;;  %v282_v9 = vpop.xlane.xlu0 %281  ;;  %p1027_p0 = scmp.ne.s32.totalorder %s820_s6, %s1026_s7  ;;  %p1032_p2 = scmp.lt.s32.totalorder %s1026_s7, %s1026_s7 }
 0x105   :  { %v305_v12 = vadd.f32 %v285_v57, %v221_v38  ;;  %v304_v48 = vadd.f32 %v282_v9, %v218_v55  ;;  %v521_v63 = vcombine.low %v478_v59, %v479_v51  ;;  %v667_v52 = vcombine.low %v446_v62, %v447_v60 }
 0x106   :  { %p1033_p3 = por %p1032_p2, %p1031_p1 }
 0x107   :  { %v337_v2 = vmul.f32 0.0078125, %v305_v12  ;;  %v336_v3 = vmul.f32 0.0078125, %v304_v48  ;;  %918 = vmatmul.mubr.msk.f32.gmra.mrb[4].mxu1 %vm524_vm1, %v521_v63  ;;  %946 = vmatmul.mubr.msk.f32.gmra.mrb[4].mxu0 %vm524_vm1, %v667_v52 }
 0x108   :  { %v227_v53 = vpop.xlane.xlu1 %226  ;;  %v224_v8 = vpop.xlane.xlu0 %223  ;;  %p1034_p4 = pnand %p1033_p3, %p1027_p0 }
 0x109   :  { %v369_v10 = vsub.f32 %v337_v2, %v353_v13  ;;  %v368_v11 = vsub.f32 %v336_v3, %v352_v49 }
 0x10b   :  { %v385_v36 = vmax.f32 %v369_v10, 0.0  ;;  %v384_v33 = vmax.f32 %v368_v11, 0.0 }
 0x10c   :  { %v291_v37 = vpop.xlane.xlu1 %290  ;;  %v288_v42 = vpop.xlane.xlu0 %287 }
 0x10d   :  { %v401_v25 = vadd.f32 1e-05, %v385_v36  ;;  %v400_v15 = vadd.f32 1e-05, %v384_v33  ;;  %v307_v54 = vadd.f32 %v291_v37, %v227_v53  ;;  %v306_v18 = vadd.f32 %v288_v42, %v224_v8 }
 0x10f   :  { %1018 = vrsqrt.f32 %v401_v25  ;;  %v339_v0 = vmul.f32 0.0078125, %v307_v54  ;;  %v338_v5 = vmul.f32 0.0078125, %v306_v18 }
 0x110   :  { %1020 = vrsqrt.f32 %v400_v15 }
 0x111   :  { %v371_v28 = vsub.f32 %v339_v0, %v355_v19  ;;  %v370_v29 = vsub.f32 %v338_v5, %v354_v4 }
 0x113   :  { %v387_v34 = vmax.f32 %v371_v28, 0.0  ;;  %v386_v40 = vmax.f32 %v370_v29, 0.0 }
 0x115   :  { %v403_v39 = vadd.f32 1e-05, %v387_v34  ;;  %v402_v44 = vadd.f32 1e-05, %v386_v40 }
 0x117   :  { %1022 = vrsqrt.f32 %v403_v39 }
 0x118   :  { %1024 = vrsqrt.f32 %v402_v44 }
 0x119   :  { %v1019_v22 = vpop.eup %1018 }
 0x11a   :  { %v1021_v41 = vpop.eup %1020  ;;  %v481_v35 = vmul.f32 %v1019_v22, %v465_v43  ;;  %v449_v24 = vmul.f32 %v1019_v22, %v433_v6 }
 0x11b   :  { %v480_v38 = vmul.f32 %v1021_v41, %v464_v23  ;;  %v448_v55 = vmul.f32 %v1021_v41, %v432_v46 }
 0x11d   :  { %v522_v1 = vcombine.low %v480_v38, %v481_v35  ;;  %v668_v47 = vcombine.low %v448_v55, %v449_v24 }
 0x11f   :  { %920 = vmatprep.mubr.msk.f32.mxu1 %vm524_vm1, %v522_v1  ;;  %948 = vmatprep.mubr.msk.f32.mxu0 %vm524_vm1, %v668_v47 }
 0x121   :  { %v1023_v45 = vpop.eup %1022 }
 0x122   :  { %v1025_v7 = vpop.eup %1024  ;;  %v483_v50 = vmul.f32 %v1023_v45, %v467_v20  ;;  %v451_v51 = vmul.f32 %v1023_v45, %v435_v16 }
 0x123   :  { %v482_v60 = vmul.f32 %v1025_v7, %v466_v21  ;;  %v450_v58 = vmul.f32 %v1025_v7, %v434_v17 }
 0x125   :  { %v523_v59 = vcombine.low %v482_v60, %v483_v50  ;;  %v669_v62 = vcombine.low %v450_v58, %v451_v51 }
 0x127   :  { %921 = vmatmul.mubr.msk.f32.gmra.mrb[6].mxu1 %vm524_vm1, %v523_v59  ;;  %949 = vmatmul.mubr.msk.f32.gmra.mrb[6].mxu0 %vm524_vm1, %v669_v62 }
 0x19a   :  { %v913_v57 = vpop.f32.mrb[0].mxu1  ;;  %v941_v26 = vpop.f32.mrb[0].mxu0 }
 0x19b   :  { %v758_v27 = vadd.f32 %v941_v26, %v913_v57  ;;  %v607_v9 = vpop.f32.mrb[1].mxu1  ;;  %v752_v31 = vpop.f32.mrb[1].mxu0 }
 0x19c   :  { %v753_v12 = vadd.f32 %v752_v31, %v607_v9 }
 0x19d   :  { %v799_v48 = vadd.f32 %v862_v30, %v758_v27 }
 0x19e   :  { %v798_v63 = vadd.f32 %v862_v30, %v753_v12 }
 0x19f   :  { %807 = vst.msk [vmem:[#allocation2 + $0x8] sm:$0xff] %vm524_vm1, %v799_v48 }
 0x1a0   :  { %806 = vst.msk [vmem:[#allocation2] sm:$0xff] %vm524_vm1, %v798_v63 }
 0x1ba   :  { %v916_v52 = vpop.f32.mrb[2].mxu1  ;;  %v944_v56 = vpop.f32.mrb[2].mxu0 }
 0x1bb   :  { %v768_v13 = vadd.f32 %v944_v56, %v916_v52  ;;  %v617_v61 = vpop.f32.mrb[3].mxu1  ;;  %v762_v2 = vpop.f32.mrb[3].mxu0 }
 0x1bc   :  { %v763_v49 = vadd.f32 %v762_v2, %v617_v61 }
 0x1bd   :  { %v801_v3 = vadd.f32 %v862_v30, %v768_v13 }
 0x1be   :  { %v800_v53 = vadd.f32 %v862_v30, %v763_v49 }
 0x1bf   :  { %809 = vst.msk [vmem:[#allocation2 + $0x18] sm:$0xff] %vm524_vm1, %v801_v3 }
 0x1c0   :  { %808 = vst.msk [vmem:[#allocation2 + $0x10] sm:$0xff] %vm524_vm1, %v800_v53 }
 0x1da   :  { %v919_v8 = vpop.f32.mrb[4].mxu1  ;;  %v947_v10 = vpop.f32.mrb[4].mxu0 }
 0x1db   :  { %v778_v11 = vadd.f32 %v947_v10, %v919_v8  ;;  %v627_v32 = vpop.f32.mrb[5].mxu1  ;;  %v772_v14 = vpop.f32.mrb[5].mxu0 }
 0x1dc   :  { %v773_v36 = vadd.f32 %v772_v14, %v627_v32 }
 0x1dd   :  { %v803_v33 = vadd.f32 %v862_v30, %v778_v11 }
 0x1de   :  { %v802_v37 = vadd.f32 %v862_v30, %v773_v36 }
 0x1df   :  { %811 = vst.msk [vmem:[#allocation2 + $0x28] sm:$0xff] %vm524_vm1, %v803_v33 }
 0x1e0   :  { %810 = vst.msk [vmem:[#allocation2 + $0x20] sm:$0xff] %vm524_vm1, %v802_v37 }
 0x1fa   :  { %v922_v42 = vpop.f32.mrb[6].mxu1  ;;  %v950_v25 = vpop.f32.mrb[6].mxu0 }
 0x1fb   :  { %v788_v15 = vadd.f32 %v950_v25, %v922_v42  ;;  %v637_v54 = vpop.f32.mrb[7].mxu1  ;;  %v782_v18 = vpop.f32.mrb[7].mxu0 }
 0x1fc   :  { %v783_v19 = vadd.f32 %v782_v18, %v637_v54 }
 0x1fd   :  { %v805_v0 = vadd.f32 %v862_v30, %v788_v15 }
 0x1fe   :  { %v804_v4 = vadd.f32 %v862_v30, %v783_v19 }
 0x1ff   :  { %813 = vst.msk [vmem:[#allocation2 + $0x38] sm:$0xff] %vm524_vm1, %v805_v0 }
 0x200   :  { %812 = vst.msk [vmem:[#allocation2 + $0x30] sm:$0xff] %vm524_vm1, %v804_v4 }
 0x201   :  { %1037 = shalt.err (!%p1034_p4)
}
 0x202   :  { %s1038_s9 = scalar_lea.hbm %s1521_s4, 1024 }
 0x203   :  { %p1039_p5 = scmp.ne.s32.totalorder %s1521_s4, %s1038_s9  ;;  %p1042_p6 = scmp.lt.u32.totalorder %s1038_s9, %s1521_s4 }
 0x205   :  { %p1044_p7 = pnand %p1042_p6, %p1039_p5 }
 0x207   :  { %1047 = shalt.err (!%p1044_p7)
}
 0x208   :  { %s1051_s13 = smov 128   ;;  %s1052_s14 = smov 8  }
 0x209   :  { %825 = dma.vmem_to_hbm [thread:$0]  %s820_s6, 1024, %s1521_s4, [#allocation3], %s1051_s13, %s1051_s13, %s1052_s14  }
 0x20a   :  { %1048 = dma.done.wait [#allocation3], 1024  }
 0x20b   :  { %1049 = vsyncadd [#allocation3], 4294966272 }
 0x20c   :  { %829 = vsyncpa [#allocation3], 1 }

</bundles_post_ra>
